<compile_context>
chip_gen: v7x
topology: tpu7x:2x2x1
jax: 0.10.0
libtpu: 0.0.40
codegen_flags: <defaults>
</compile_context>

<pallas_src>
import math

import jax
import jax.numpy as jnp
from jax import lax
from jax.experimental import pallas as pl
from jax.experimental.pallas import tpu as pltpu


def _round_up(x, m):
    return ((x + m - 1) // m) * m


def _cdiv(a, b):
    return (a + b - 1) // b


# ------------------------------ kernels -------------------------------------


def _fullk_matmul_bias_kernel(p_ref, w_ref, b_ref, o_ref):
    """(TM, K) @ (K, TN) in one shot, fused bias.  No scratch, no pl.when."""
    o_ref[...] = (
        jnp.dot(p_ref[...], w_ref[...], preferred_element_type=jnp.float32)
        + b_ref[...]
    ).astype(o_ref.dtype)


def _tiledk_matmul_bias_kernel(p_ref, w_ref, b_ref, o_ref, acc_ref):
    """Fallback for very large K: K-axis accumulation in a VMEM f32 scratch."""
    k = pl.program_id(2)

    @pl.when(k == 0)
    def _():
        acc_ref[...] = jnp.zeros_like(acc_ref)

    acc_ref[...] += jnp.dot(p_ref[...], w_ref[...],
                            preferred_element_type=jnp.float32)

    @pl.when(k == pl.num_programs(2) - 1)
    def _():
        o_ref[...] = (acc_ref[...] + b_ref[...]).astype(o_ref.dtype)


# --------------------------- tile selection ----------------------------------

_VMEM_BUDGET = 40 * 1024 * 1024  # keeps 2-deep pipelining alive on v7x (64 MiB)


def _choose_tiles(M, K, Cout, out_itemsize):
    """Pick (tm, tn, tk, tiled_k) under the VMEM budget.

    Prefers: full-K contraction (no accumulator), 256-wide N tiles when Cout
    allows (v6e/v7x 256^2 MXU; 128 otherwise keeps v5e tiles lane-exact), and
    the largest M tile that still leaves >= 2 parallel M tiles for megacore.
    """
    N_pad = _round_up(Cout, 128)
    tn = 256 if N_pad % 256 == 0 else 128

    tm = 1024
    while tm > 128 and _cdiv(M, tm) < 2:
        tm //= 2

    def ws(tm_, tk_, with_acc):
        # default BlockSpec double-buffering on every operand + optional acc
        b = 2 * (tm_ * tk_ * 2 + tk_ * tn * 2 + tn * 4 + tm_ * tn * out_itemsize)
        if with_acc:
            b += tm_ * tn * 4
        return b

    # Preferred path: the whole (padded) K dimension in one block.
    tk = _round_up(K, 128)
    tiled_k = False
    while ws(tm, tk, False) > _VMEM_BUDGET and tm > 256:
        tm //= 2
    if ws(tm, tk, False) > _VMEM_BUDGET:
        # K too large to hold resident -> tile it and accumulate in VMEM.
        tiled_k = True
        tk = 1024
        while ws(tm, tk, True) > _VMEM_BUDGET and tk > 256:
            tk //= 2

    return tm, tn, tk, tiled_k


# ------------------------------ forward --------------------------------------


def deconv2d_forward(x_nchw, weight, bias=None, *, stride=1, padding=1,
                     output_padding=0, compute_dtype=jnp.bfloat16):
    """ConvTranspose2d forward matching PyTorch semantics.

    x_nchw : (N, Cin, H, W)
    weight : (Cin, Cout, KH, KW)   (PyTorch ConvTranspose2d weight layout)
    bias   : (Cout,) or None
    returns: (N, Cout, Hout, Wout), Hout = (H-1)*s - 2p + KH + op
    """
    N, Cin, H, W = x_nchw.shape
    Cin_w, Cout, KH, KW = weight.shape
    assert Cin_w == Cin
    s, p, op = stride, padding, output_padding

    Hout = (H - 1) * s - 2 * p + KH + op
    Wout = (W - 1) * s - 2 * p + KW + op

    out_dtype = x_nchw.dtype
    out_itemsize = jnp.dtype(out_dtype).itemsize
    M = N * Hout * Wout
    K = KH * KW * Cin

    tm, tn, tk, tiled_k = _choose_tiles(M, K, Cout, out_itemsize)
    M_pad = _round_up(M, tm)
    K_pad = _round_up(K, tk)
    N_pad = _round_up(Cout, tn)

    # ---- glue (plain JAX, outside the kernel) -------------------------------
    # Cast once on the *input* (KH*KW x smaller than the patch matrix), then
    # fold stride dilation + (possibly negative) edge padding + output_padding
    # into a single lax.pad.
    # TODO(synk): for stride > 1 a sub-pixel (phase) decomposition would avoid
    # materializing and multiplying the structural zeros inserted by dilation.
    x_c = x_nchw.astype(compute_dtype)
    pad_cfg = ((0, 0, 0), (0, 0, 0),
               (KH - 1 - p, KH - 1 - p + op, s - 1),
               (KW - 1 - p, KW - 1 - p + op, s - 1))
    x_pad = lax.pad(x_c, jnp.array(0, dtype=compute_dtype), pad_cfg)
    # TODO(synk): keeping the surrounding model NHWC (and bf16) end-to-end
    # would remove the NCHW<->NHWC relayout passes at both ends.
    x_nhwc = jnp.transpose(x_pad, (0, 2, 3, 1))            # (N, Hp, Wp, Cin)

    # im2col: ONE concat, already in compute dtype; the K lane padding is an
    # extra zero block inside the same concat (no separate full-matrix pad).
    # TODO(synk): indexing the KH*KW shifted windows of x_nhwc directly from
    # the kernel (per-tap Element offsets or in-VMEM tap replication) would
    # remove the KH*KW x HBM amplification of the materialized im2col matrix.
    taps = [x_nhwc[:, kh:kh + Hout, kw:kw + Wout, :]
            for kh in range(KH) for kw in range(KW)]
    if K_pad > K:
        taps.append(jnp.zeros((N, Hout, Wout, K_pad - K), dtype=compute_dtype))
    patches = jnp.concatenate(taps, axis=-1).reshape(M, K_pad)
    if M_pad > M:
        # small row-remainder pad; fuses with the concat under XLA
        patches = jnp.pad(patches, ((0, M_pad - M), (0, 0)))

    # w_mat[(kh*KW+kw)*Cin + ci, co] = weight[ci, co, KH-1-kh, KW-1-kw]
    w_hwio = jnp.transpose(jnp.flip(weight, axis=(2, 3)), (2, 3, 0, 1))
    w_mat = w_hwio.reshape(K, Cout).astype(compute_dtype)
    w_mat = jnp.pad(w_mat, ((0, K_pad - K), (0, N_pad - Cout)))

    if bias is None:
        bias = jnp.zeros((Cout,), dtype=jnp.float32)
    b_row = jnp.pad(bias.astype(jnp.float32), (0, N_pad - Cout)).reshape(1, N_pad)

    # VMEM limit sized to the actual working set, capped at 48 MiB (safe on
    # v7x's 64 MiB physical VMEM; well under v5e/v6e's 128 MiB).
    est = 2 * (tm * tk * 2 + tk * tn * 2 + tn * 4 + tm * tn * out_itemsize)
    if tiled_k:
        est += tm * tn * 4
    vmem_limit = int(min(48 << 20, max(32 << 20, est + (4 << 20))))

    if not tiled_k:
        # Common case: full-K contraction, grid over (M tiles, N tiles) only.
        # N-tile axis is innermost, so each patch tile is DMA'd exactly once.
        grid = (M_pad // tm, N_pad // tn)
        out = pl.pallas_call(
            _fullk_matmul_bias_kernel,
            out_shape=jax.ShapeDtypeStruct((M_pad, N_pad), out_dtype),
            grid_spec=pltpu.PrefetchScalarGridSpec(
                num_scalar_prefetch=0,
                grid=grid,
                in_specs=[
                    pl.BlockSpec((tm, K_pad), lambda i, j: (i, 0)),
                    pl.BlockSpec((K_pad, tn), lambda i, j: (0, j)),
                    pl.BlockSpec((1, tn), lambda i, j: (0, j)),
                ],
                out_specs=pl.BlockSpec((tm, tn), lambda i, j: (i, j)),
            ),
            compiler_params=pltpu.CompilerParams(
                dimension_semantics=("parallel", "parallel"),
                vmem_limit_bytes=vmem_limit,
            ),
        )(patches, w_mat, b_row)
    else:
        # Fallback for very large K: tiled K with VMEM f32 accumulation.
        grid = (M_pad // tm, N_pad // tn, K_pad // tk)
        out = pl.pallas_call(
            _tiledk_matmul_bias_kernel,
            out_shape=jax.ShapeDtypeStruct((M_pad, N_pad), out_dtype),
            grid_spec=pltpu.PrefetchScalarGridSpec(
                num_scalar_prefetch=0,
                grid=grid,
                in_specs=[
                    pl.BlockSpec((tm, tk), lambda i, j, k: (i, k)),
                    pl.BlockSpec((tk, tn), lambda i, j, k: (k, j)),
                    pl.BlockSpec((1, tn), lambda i, j, k: (0, j)),
                ],
                out_specs=pl.BlockSpec((tm, tn), lambda i, j, k: (i, j)),
                scratch_shapes=[pltpu.VMEM((tm, tn), jnp.float32)],
            ),
            compiler_params=pltpu.CompilerParams(
                dimension_semantics=("parallel", "parallel", "arbitrary"),
                vmem_limit_bytes=vmem_limit,
            ),
        )(patches, w_mat, b_row)

    # TODO(synk): emitting NHWC (and the model's activation dtype) directly
    # would drop the slice + transpose relayout passes below.
    out = out[:M, :Cout].reshape(N, Hout, Wout, Cout)
    return jnp.transpose(out, (0, 3, 1, 2))                 # back to NCHW


# ------------------------------ reference ------------------------------------


def _reference_deconv(x_nchw, weight, bias, *, stride=1, padding=1,
                      output_padding=0):
    """Independent reference via lax.conv_general_dilated (lhs dilation)."""
    _, Cout, KH, KW = weight.shape
    s, p, op = stride, padding, output_padding
    rhs_oihw = jnp.transpose(jnp.flip(weight, axis=(2, 3)), (1, 0, 2, 3))
    y = lax.conv_general_dilated(
        x_nchw, rhs_oihw,
        window_strides=(1, 1),
        padding=[(KH - 1 - p, KH - 1 - p + op), (KW - 1 - p, KW - 1 - p + op)],
        lhs_dilation=(s, s),
        dimension_numbers=("NCHW", "OIHW", "NCHW"),
        precision=lax.Precision.HIGHEST,
    )
    return y + bias.reshape(1, Cout, 1, 1)


if __name__ == "__main__":
    # Module config (Deconv2d defaults): kernel_size=4, stride=1, padding=1,
    # output_padding=0, bias=True.
    N, Cin, Cout, H, W = 2, 4, 8, 16, 16
    K, S, P, OP = 4, 1, 1, 0

    key = jax.random.PRNGKey(0)
    kx, kw, kb = jax.random.split(key, 3)

    x = jax.random.normal(kx, (N, Cin, H, W), dtype=jnp.float32)

    # Deterministic parameter init (shapes from nn.ConvTranspose2d(Cin, Cout, 4, ...)).
    bound = 1.0 / math.sqrt(Cin * K * K)
    weight = jax.random.uniform(kw, (Cin, Cout, K, K), dtype=jnp.float32,
                                minval=-bound, maxval=bound)
    bias = jax.random.uniform(kb, (Cout,), dtype=jnp.float32,
                              minval=-bound, maxval=bound)

    y = deconv2d_forward(x, weight, bias, stride=S, padding=P, output_padding=OP)
    y = jax.block_until_ready(y)

    # Reference on bf16-quantized operands (the kernel feeds the MXU bf16
    # operands with f32 accumulation), so the comparison only sees
    # accumulation-order noise.
    x_q = x.astype(jnp.bfloat16).astype(jnp.float32)
    w_q = weight.astype(jnp.bfloat16).astype(jnp.float32)
    y_ref = _reference_deconv(x_q, w_q, bias, stride=S, padding=P, output_padding=OP)

    Hout = (H - 1) * S - 2 * P + K + OP
    assert y.shape == (N, Cout, Hout, Hout)
    assert jnp.allclose(y, y_ref, atol=2e-3, rtol=2e-3), "mismatch vs reference"

    print("KERNEL_OK")
</pallas_src>

<mosaic_0001>
module attributes {stable_mosaic.version = 11 : i64} {
  func.func @_fullk_matmul_bias_kernel(%arg0: i32, %arg1: i32, %arg2: memref<512x128xbf16, #tpu.memory_space<vmem>>, %arg3: memref<128x128xbf16, #tpu.memory_space<vmem>>, %arg4: memref<1x128xf32, #tpu.memory_space<vmem>>, %arg5: memref<512x128xf32, #tpu.memory_space<vmem>>) attributes {dimension_semantics = [#tpu.dimension_semantics<parallel>, #tpu.dimension_semantics<parallel>], iteration_bounds = array<i64: 2, 1>, scalar_prefetch = 0 : i64, scratch_operands = 0 : i64, tpu.core_type = #tpu.core_type<tc>, window_params = [{transform_indices = @transform_0, window_bounds = array<i64: 512, 128>}, {transform_indices = @transform_1, window_bounds = array<i64: 128, 128>}, {transform_indices = @transform_2, window_bounds = array<i64: 1, 128>}, {transform_indices = @transform_3, window_bounds = array<i64: 512, 128>}]} {
    %c0 = arith.constant 0 : index
    %c0_0 = arith.constant 0 : index
    %0 = vector.load %arg2[%c0, %c0_0] : memref<512x128xbf16, #tpu.memory_space<vmem>>, vector<512x128xbf16>
    %c0_1 = arith.constant 0 : index
    %c0_2 = arith.constant 0 : index
    %1 = vector.load %arg3[%c0_1, %c0_2] : memref<128x128xbf16, #tpu.memory_space<vmem>>, vector<128x128xbf16>
    %cst = arith.constant dense<0.000000e+00> : vector<512x128xf32>
    %2 = tpu.matmul %0, %1, %cst {dimension_numbers = #tpu.dot_dimension_numbers<[1], [0], [0], [1], [0, 0, 1, 1], [], []>} : vector<512x128xbf16>, vector<128x128xbf16>, vector<512x128xf32> -> vector<512x128xf32>
    %c0_3 = arith.constant 0 : index
    %c0_4 = arith.constant 0 : index
    %3 = vector.load %arg4[%c0_3, %c0_4] : memref<1x128xf32, #tpu.memory_space<vmem>>, vector<1x128xf32>
    %4 = vector.broadcast %3 : vector<1x128xf32> to vector<512x128xf32>
    %5 = arith.addf %2, %4 : vector<512x128xf32>
    %c0_5 = arith.constant 0 : index
    %c0_6 = arith.constant 0 : index
    %6 = vector.load %arg5[%c0_5, %c0_6] : memref<512x128xf32, #tpu.memory_space<vmem>>, vector<512x128xf32>
    tpu.vector_store %arg5[%c0_5, %c0_6], %5 {strides = array<i32>} : memref<512x128xf32, #tpu.memory_space<vmem>>, vector<512x128xf32>,
    return
  }
  func.func @transform_0(%arg0: i32, %arg1: i32) -> (i32, i32) {
    %c0_i32 = arith.constant 0 : i32
    %c0_i32_0 = arith.constant 0 : i32
    return %arg0, %c0_i32 : i32, i32
  }
  func.func @transform_1(%arg0: i32, %arg1: i32) -> (i32, i32) {
    %c0_i32 = arith.constant 0 : i32
    %c0_i32_0 = arith.constant 0 : i32
    return %c0_i32, %arg1 : i32, i32
  }
  func.func @transform_2(%arg0: i32, %arg1: i32) -> (i32, i32) {
    %c0_i32 = arith.constant 0 : i32
    %c0_i32_0 = arith.constant 0 : i32
    return %c0_i32, %arg1 : i32, i32
  }
  func.func @transform_3(%arg0: i32, %arg1: i32) -> (i32, i32) {
    %c0_i32 = arith.constant 0 : i32
    return %arg0, %arg1 : i32, i32
  }
}

</mosaic_0001>

<bundles_post_ra>
// kernel: tpu_custom_call.1
= control target key start
LH: loop header
LB: loop body
LE: loop exit
PB: predicated region body
PF: predicated region fallthrough
CT: control target
= control target key end

     0   :  { %8 = vsyncpa [#allocation3], 0  ;;  %s1927_s0 = inlined_call_operand.hbm [shape: bf16[1024,128], index: 0, kind: input, shape index: {}]   ;;  %s1928_s1 = inlined_call_operand.hbm [shape: bf16[128,128], index: 1, kind: input, shape index: {}]   ;;  %s1929_s2 = inlined_call_operand.vmem [shape: f32[1,128], index: 2, kind: input, shape index: {}]   ;;  %s1930_s3 = inlined_call_operand.hbm [shape: f32[1024,128], index: 3, kind: output, shape index: {}]  }
   0x1   :  { %10 = vsyncpa [#allocation3 + $0x1], 0 }
   0x2   :  { %11 = vsyncpa [#allocation6], 0 }
   0x3   :  { %12 = vsyncpa [#allocation4], 0 }
   0x4   :  { %14 = vsyncpa [#allocation4 + $0x1], 0  ;;  %s1531_s12 = smov 0   ;;  %s1533_s13 = smov 0  }
   0x5   :  { %s1535_s14 = smov 0   ;;  %s1537_s15 = smov 0  }
   0x6   :  { %s1539_s16 = smov 0   ;;  %s1541_s17 = smov 0  }
   0x7 LB: > { %s1044_s18 = sadd.s32 4294967295, %s1502_s17   ;;  %s1045_s19 = sadd.s32 4294967294, %s1502_s17   ;;  %s1502_s17 = sphi %s1541_s17, %s20_s17   ;;  %s1498_s16 = sphi %s1539_s16, %s1954_s16   ;;  %s1494_s15 = sphi %s1537_s15, %s1953_s15   ;;  %s1490_s14 = sphi %s1535_s14, %s1952_s14   ;;  %s1486_s13 = sphi %s1533_s13, %s1951_s13   ;;  %s1482_s12 = sphi %s1531_s12, %s1950_s12  }
   0x8   : > { %p52_p0 = scmp.ne.s32.totalorder %s1486_s13, %s1482_s12  ;;  %p1565_p1 = scmp.eq.s32.totalorder %s1044_s18, 0 }
   0x9   : > { %p1569_p2 = scmp.eq.s32.totalorder %s1044_s18, 1  ;;  %p136_p3 = scmp.eq.s32.totalorder %s1045_s19, 1 }
   0xa   : > { %s1935_s20 = scalar_select %p1565_p1, 1, 0 }
   0xb   : > { %s1936_s21 = scalar_select %p1569_p2, 1, 0 }
   0xc   : > { %p1575_p4 = por %p1565_p1, %p52_p0  ;;  %p1046_p5 = scmp.ge.s32.totalorder %s1502_s17, 1 }
   0xd   : > { %p1580_p6 = por %p136_p3, %p52_p0  ;;  %p143_p7 = scmp.lt.s32.totalorder %s1502_s17, 3 }
   0xe   : > { %s1937_s22 = scalar_select %p1575_p4, 1, 0 }
   0xf   : > { %s1938_s23 = scalar_select %p1580_p6, 1, 0 }
  0x10   : > { %p1585_p8 = pnand %p1046_p5, %p143_p7  ;;  %s1504_s25 = smov [#allocation5]  }
  0x11   : > { %s157_s26 = sshll.u32 %s1504_s25, 4  ;;  %s32_s28 = sadd.s32 1, %s1498_s16  ;;  %s158_s26 = int_to_ptr.vmem [resolvable:$true] %s157_s26 }
  0x12   : > { %s1939_s24 = scalar_select %p1585_p8, 1, 0 }
  0x13   : > { %p1249_p9 = pneg %p1585_p8  ;;  %s1358_s4 = scalar_lea.hbm %s1928_s1, 1024 }
  0x14   : > { %p1359_p12 = scmp.ne.s32.totalorder %s1928_s1, %s1358_s4  ;;  %p1365_p5 = scmp.lt.u32.totalorder %s1358_s4, %s1928_s1 }
  0x15   : > { %p1594_p11 = pnand %p1249_p9, %p1565_p1 }
  0x17   : > { %p1360_p13 = pneg %p1594_p11 }
  0x19   : > { %p1361_p0 = pnand %p1360_p13, %p1359_p12 }
  0x1b   : > { %p1362_p3 = pneg %p1361_p0 }
  0x1d   : > { %p1367_p7 = pnand %p1365_p5, %p1362_p3 }
  0x1f   : > { %1370 = shalt.err (!%p1367_p7)
}
  0x20   : > { %s1371_s9 = scalar_lea.vmem %s158_s26, 1024  ;;  %p1379_p1 = scmp.lt.s32.totalorder %s158_s26, %s158_s26 }
  0x21   : > { %p1372_p9 = scmp.ne.s32.totalorder %s158_s26, %s1371_s9  ;;  %p1380_p4 = scmp.lt.s32.totalorder %s1371_s9, %s1371_s9 }
  0x23   : > { %p1374_p10 = pnand %p1372_p9, %p1360_p13  ;;  %p1381_p8 = por %p1380_p4, %p1379_p1 }
  0x25   : > { %p1375_p6 = pneg %p1374_p10 }
  0x27   : > { %p1382_p2 = pnand %p1381_p8, %p1375_p6 }
  0x29   : > { %1385 = shalt.err (!%p1382_p2)
}
  0x2a   : > { %s1505_s10 = smov 64   ;;  %s1506_s11 = smov 4  }
  0x2b   : > { %1252 = dma.hbm_to_vmem [thread:$0]  (!%p1594_p11), %s1928_s1, 1024, %s158_s26, [#allocation6], %s1505_s10, %s1505_s10, %s1506_s11  }
  0x2c   : > { %p34_p1 = scmp.ge.s32.totalorder %s32_s28, 2  ;;  %s39_s25 = sadd.s32 1, %s1490_s14 }
  0x2d   : > { %p46_p2 = scmp.ne.s32.totalorder %s1490_s14, %s1486_s13  ;;  %p47_p4 = scmp.eq.s32.totalorder %s1502_s17, 0 }
  0x2e   : > { %s1956_s28 = smov (%p34_p1, %s32_s28), 0  ;;  %p1942_p8 = scmp.ne.s32.totalorder %s1936_s21, 0 }
  0x2f   : > { %p1624_p6 = por %p47_p4, %p46_p2  ;;  %s36_s30 = ssub.s32 %s1498_s16, %s1956_s28 }
  0x30   : > { %p1630_p10 = por %p1942_p8, %p46_p2  ;;  %p1262_p12 = scmp.lt.s32.totalorder %s1502_s17, 2 }
  0x31   : > { %p37_p11 = scmp.eq.s32.totalorder %s36_s30, 0  ;;  %s177_s26 = sand.u32 1, %s1490_s14  }
  0x32   : > { %s1050_s4 = sshll.u32 %s177_s26, 8  ;;  %s1103_s6 = sshll.u32 %s1498_s16, 12 }
  0x33   : > { %s1639_s5 = scalar_select %p37_p11, %s1490_s14, %s39_s25  }
  0x34   : > { %s1645_s9 = scalar_lea.hbm %s1927_s0, %s1103_s6  ;;  %s181_s21 = scalar_lea.vmem [#allocation2], %s1050_s4 }
  0x35   : > { %s188_s18 = sshll.u32 %s181_s21, 4  ;;  %p1651_p13 = pnand %p1262_p12, %p1624_p6  ;;  %s1647_s18 = int_to_ptr.vmem [resolvable:$true] %s188_s18 }
  0x36   : > { %s1655_s25 = scalar_lea.sflag [#allocation3], %s177_s26  ;;  %s1386_s30 = scalar_lea.hbm %s1645_s9, 4096 }
  0x37   : > { %p1387_p0 = scmp.ne.s32.totalorder %s1645_s9, %s1386_s30  ;;  %p1388_p3 = pneg %p1651_p13 }
  0x38   : > { %s1391_s29 = scalar_lea.hbm %s1927_s0, 8192  ;;  %p1392_p9 = scmp.lt.u32.totalorder %s1645_s9, %s1927_s0 }
  0x39   : > { %p1389_p5 = pnand %p1388_p3, %p1387_p0  ;;  %p1393_p1 = scmp.lt.u32.totalorder %s1391_s29, %s1386_s30 }
  0x3a   : > { %p1395_p4 = scmp.lt.u32.totalorder %s1386_s30, %s1645_s9 }
  0x3b   : > { %p1390_p7 = pneg %p1389_p5  ;;  %p1394_p2 = por %p1393_p1, %p1392_p9 }
  0x3d   : > { %p1396_p6 = por %p1395_p4, %p1394_p2 }
  0x3f   : > { %p1397_p8 = pnand %p1396_p6, %p1390_p7 }
  0x41   : > { %1400 = shalt.err (!%p1397_p8)
}
  0x42   : > { %s1401_s26 = scalar_lea.vmem %s1647_s18, 4096  ;;  %s1507_s21 = smov [#allocation2]  }
  0x43   : > { %p1402_p12 = scmp.ne.s32.totalorder %s1647_s18, %s1401_s26  ;;  %s1406_s4 = sshll.u32 %s1507_s21, 4  ;;  %s1407_s4 = int_to_ptr.vmem [resolvable:$false] %s1406_s4 }
  0x44   : > { %s1408_s6 = scalar_lea.vmem %s1407_s4, 8192  ;;  %p1409_p5 = scmp.lt.s32.totalorder %s1647_s18, %s1407_s4 }
  0x45   : > { %p1404_p11 = pnand %p1402_p12, %p1388_p3  ;;  %p1410_p9 = scmp.lt.s32.totalorder %s1408_s6, %s1401_s26 }
  0x47   : > { %p1405_p0 = pneg %p1404_p11  ;;  %p1411_p1 = por %p1410_p9, %p1409_p5 }
  0x49   : > { %p1412_p2 = pnand %p1411_p1, %p1405_p0 }
  0x4b   : > { %1415 = shalt.err (!%p1412_p2)
}
  0x4c   : > { %1256 = dma.hbm_to_vmem [thread:$0]  (!%p1651_p13), %s1645_s9, 4096, %s1647_s18, %s1655_s25, %s1505_s10, %s1505_s10, %s1506_s11  }
  0x4d   : > { %p1945_p3 = scmp.ne.s32.totalorder %s1939_s24, 0 }
  0x4e   : > { %s1689_s30 = sand.u32 (!%p1945_p3), 1, %s1486_s13   ;;  %p1946_p7 = scmp.ne.s32.totalorder (!%p1945_p3), %s1937_s22, 0 }
  0x4f   : > { %200 = sbr.rel (%p1945_p3) target bundleno = 411 (0x19b), region = 32  ;;  %s1054_s29 = sshll.u32 (!%p1945_p3), %s1689_s30, 8 }
  0x50   : > { %s203_s7 = scalar_lea.sflag (!%p1945_p3), [#allocation3], %s1689_s30  ;;  %s1693_s8 = scalar_lea.vmem (!%p1945_p3), [#allocation2], %s1054_s29 }
  0x56   : > { %1469 = dma.done.wait (%p1946_p7), %s203_s7, 4096  }
  0x57   : > { %1471 = vsyncadd (%p1946_p7), %s203_s7, 4294963200  ;;  %p1947_p13 = scmp.ne.s32.totalorder %s1935_s20, 0 }
  0x59   : > { %1473 = dma.done.wait (%p1947_p13), [#allocation6], 1024  }
  0x5a   : > { %1475 = vsyncadd (%p1947_p13), [#allocation6], 4294966272  ;;  %v1318_v0 = vld [vmem:[#allocation5] sm:$0xff]   ;;  %v1319_v1 = vld [vmem:[#allocation5 + $0x8] sm:$0xff]   ;;  %s1056_s20 = sshll.u32 %s1689_s30, 9  ;;  %s1104_s11 = sshll.u32 %s1494_s15, 13 }
  0x5b   : > { %1145 = vmatprep.subr.bf16.mxu0 %v1318_v0  ;;  %1225 = vmatprep.subr.bf16.mxu1 %v1318_v0  ;;  %v1320_v2 = vld [vmem:[#allocation5 + $0x10] sm:$0xff]   ;;  %v1321_v3 = vld [vmem:[#allocation5 + $0x18] sm:$0xff]   ;;  %v1326_v4 = vld [vmem:[%s1693_s8] sm:$0xff]   ;;  %s1745_s10 = scalar_lea.vmem [#allocation7], %s1056_s20  ;;  %s1868_s19 = scalar_lea.hbm %s1930_s3, %s1104_s11 }
  0x5c   : > { %1146 = vmatpush3.bf16.msra.mxu0 %v1318_v0  ;;  %1233 = vmatpush3.bf16.msra.mxu1 %v1318_v0  ;;  %v1327_v5 = vld [vmem:[%s1693_s8 + $0x80] sm:$0xff]   ;;  %v1323_v7 = vld [vmem:[#allocation5 + $0x28] sm:$0xff]   ;;  %v1324_v8 = vld [vmem:[#allocation5 + $0x30] sm:$0xff]   ;;  %s937_s9 = sshll.u32 %s1745_s10, 4  ;;  %s923_s25 = scalar_lea.sflag [#allocation4], %s1689_s30  ;;  %s1870_s9 = int_to_ptr.vmem [resolvable:$true] %s937_s9 }
  0x5d   : > { %1147 = vmatprep.subr.bf16.mxu0 %v1319_v1  ;;  %1226 = vmatprep.subr.bf16.mxu1 %v1319_v1  ;;  %v1322_v6 = vld [vmem:[#allocation5 + $0x20] sm:$0xff]   ;;  %v1325_v9 = vld [vmem:[#allocation5 + $0x38] sm:$0xff]   ;;  %v1328_v10 = vld [vmem:[%s1693_s8 + $0x8] sm:$0xff]   ;;  %s1416_s26 = scalar_lea.vmem %s1870_s9, 8192  ;;  %s1508_s21 = smov [#allocation7]  }
  0x5e   : > { %1161 = vmatprep.mubr.bf16.mxu0 %v1326_v4  ;;  %1193 = vmatprep.mubr.bf16.mxu1 %v1327_v5  ;;  %v1329_v11 = vld [vmem:[%s1693_s8 + $0x88] sm:$0xff]   ;;  %v1330_v12 = vld [vmem:[%s1693_s8 + $0x10] sm:$0xff]   ;;  %v1332_v14 = vld [vmem:[%s1693_s8 + $0x18] sm:$0xff]   ;;  %p1417_p4 = scmp.ne.s32.totalorder %s1870_s9, %s1416_s26  ;;  %s1420_s4 = sshll.u32 %s1508_s21, 4  ;;  %s1421_s4 = int_to_ptr.vmem [resolvable:$false] %s1420_s4 }
  0x5f   : > { %v1331_v13 = vld [vmem:[%s1693_s8 + $0x90] sm:$0xff]   ;;  %v1333_v15 = vld [vmem:[%s1693_s8 + $0x98] sm:$0xff]   ;;  %v1334_v16 = vld [vmem:[%s1693_s8 + $0x20] sm:$0xff]   ;;  %s1422_s6 = scalar_lea.vmem %s1421_s4, 16384  ;;  %p1423_p12 = scmp.lt.s32.totalorder %s1870_s9, %s1421_s4 }
  0x60   : > { %1148 = vmatpush3.bf16.msra.mxu0 %v1319_v1  ;;  %1234 = vmatpush3.bf16.msra.mxu1 %v1319_v1  ;;  %v1335_v17 = vld [vmem:[%s1693_s8 + $0xa0] sm:$0xff]   ;;  %v1336_v18 = vld [vmem:[%s1693_s8 + $0x28] sm:$0xff]   ;;  %v1338_v20 = vld [vmem:[%s1693_s8 + $0x30] sm:$0xff]   ;;  %p1418_p6 = pnand %p1417_p4, %p1630_p10  ;;  %p1424_p11 = scmp.lt.s32.totalorder %s1422_s6, %s1416_s26 }
  0x61   : > { %1149 = vmatprep.subr.bf16.mxu0 %v1320_v2  ;;  %1227 = vmatprep.subr.bf16.mxu1 %v1320_v2  ;;  %v1337_v19 = vld [vmem:[%s1693_s8 + $0xa8] sm:$0xff]   ;;  %v1339_v21 = vld [vmem:[%s1693_s8 + $0xb0] sm:$0xff]   ;;  %v1340_v22 = vld [vmem:[%s1693_s8 + $0x38] sm:$0xff]  }
  0x62   : > { %v1341_v23 = vld [vmem:[%s1693_s8 + $0xb8] sm:$0xff]   ;;  %v1342_v24 = vld [vmem:[%s1693_s8 + $0x40] sm:$0xff]   ;;  %v1344_v26 = vld [vmem:[%s1693_s8 + $0x48] sm:$0xff]   ;;  %p1419_p8 = pneg %p1418_p6  ;;  %p1425_p0 = por %p1424_p11, %p1423_p12 }
  0x63   : > { %v1343_v25 = vld [vmem:[%s1693_s8 + $0xc0] sm:$0xff]   ;;  %v1345_v27 = vld [vmem:[%s1693_s8 + $0xc8] sm:$0xff]   ;;  %v1346_v28 = vld [vmem:[%s1693_s8 + $0x50] sm:$0xff]  }
  0x64   : > { %1150 = vmatpush3.bf16.msra.mxu0 %v1320_v2  ;;  %1235 = vmatpush3.bf16.msra.mxu1 %v1320_v2  ;;  %v1347_v29 = vld [vmem:[%s1693_s8 + $0xd0] sm:$0xff]   ;;  %v1348_v30 = vld [vmem:[%s1693_s8 + $0x58] sm:$0xff]   ;;  %v1350_v32 = vld [vmem:[%s1693_s8 + $0x60] sm:$0xff]   ;;  %p1426_p5 = pnand %p1425_p0, %p1419_p8 }
  0x65   : > { %1151 = vmatprep.subr.bf16.mxu0 %v1321_v3  ;;  %1228 = vmatprep.subr.bf16.mxu1 %v1321_v3  ;;  %v1349_v31 = vld [vmem:[%s1693_s8 + $0xd8] sm:$0xff]   ;;  %v1351_v33 = vld [vmem:[%s1693_s8 + $0xe0] sm:$0xff]   ;;  %v1352_v34 = vld [vmem:[%s1693_s8 + $0x68] sm:$0xff]  }
  0x66   : > { %v1353_v35 = vld [vmem:[%s1693_s8 + $0xe8] sm:$0xff]   ;;  %v1354_v36 = vld [vmem:[%s1693_s8 + $0x70] sm:$0xff]   ;;  %v1356_v38 = vld [vmem:[%s1693_s8 + $0x78] sm:$0xff]  }
  0x67   : > { %v1355_v37 = vld [vmem:[%s1693_s8 + $0xf0] sm:$0xff]   ;;  %v1357_v39 = vld [vmem:[%s1693_s8 + $0xf8] sm:$0xff]   ;;  %v1739_v40 = vld [vmem:[%s1929_s2] ss:$0 sm:$0xff] }
  0x68   : > { %1152 = vmatpush3.bf16.msra.mxu0 %v1321_v3  ;;  %1236 = vmatpush3.bf16.msra.mxu1 %v1321_v3 }
  0x69   : > { %1153 = vmatprep.subr.bf16.mxu0 %v1322_v6  ;;  %1229 = vmatprep.subr.bf16.mxu1 %v1322_v6 }
  0x6c   : > { %1154 = vmatpush3.bf16.msra.mxu0 %v1322_v6  ;;  %1237 = vmatpush3.bf16.msra.mxu1 %v1322_v6 }
  0x6d   : > { %1155 = vmatprep.subr.bf16.mxu0 %v1323_v7  ;;  %1230 = vmatprep.subr.bf16.mxu1 %v1323_v7 }
  0x70   : > { %1156 = vmatpush3.bf16.msra.mxu0 %v1323_v7  ;;  %1238 = vmatpush3.bf16.msra.mxu1 %v1323_v7 }
  0x71   : > { %1157 = vmatprep.subr.bf16.mxu0 %v1324_v8  ;;  %1231 = vmatprep.subr.bf16.mxu1 %v1324_v8 }
  0x74   : > { %1158 = vmatpush3.bf16.msra.mxu0 %v1324_v8  ;;  %1239 = vmatpush3.bf16.msra.mxu1 %v1324_v8 }
  0x75   : > { %1159 = vmatprep.subr.bf16.mxu0 %v1325_v9  ;;  %1232 = vmatprep.subr.bf16.mxu1 %v1325_v9 }
  0x78   : > { %1160 = vmatpush3.bf16.msra.mxu0 %v1325_v9  ;;  %1240 = vmatpush3.bf16.msra.mxu1 %v1325_v9 }
  0x7b   : > { %1162 = vmatmul.mubr.bf16.vlgmr.msra.gmra.mrb[0].mxu0 %v1328_v10  ;;  %1194 = vmatmul.mubr.bf16.vlgmr.msra.gmra.mrb[0].mxu1 %v1329_v11 }
  0x7c   : > { %1165 = vmatprep.mubr.bf16.mxu0 %v1330_v12  ;;  %1197 = vmatprep.mubr.bf16.mxu1 %v1331_v13 }
  0x83   : > { %1166 = vmatmul.mubr.bf16.gmra.mrb[4].mxu0 %v1332_v14  ;;  %1198 = vmatmul.mubr.bf16.gmra.mrb[4].mxu1 %v1333_v15 }
  0x84   : > { %1169 = vmatprep.mubr.bf16.mxu0 %v1334_v16  ;;  %1201 = vmatprep.mubr.bf16.mxu1 %v1335_v17 }
  0x8b   : > { %1170 = vmatmul.mubr.bf16.gmra.mrb[8].mxu0 %v1336_v18  ;;  %1202 = vmatmul.mubr.bf16.gmra.mrb[8].mxu1 %v1337_v19 }
  0x8c   : > { %1173 = vmatprep.mubr.bf16.mxu0 %v1338_v20  ;;  %1205 = vmatprep.mubr.bf16.mxu1 %v1339_v21 }
  0x93   : > { %1174 = vmatmul.mubr.bf16.gmra.mrb[12].mxu0 %v1340_v22  ;;  %1206 = vmatmul.mubr.bf16.gmra.mrb[12].mxu1 %v1341_v23 }
  0x94   : > { %1177 = vmatprep.mubr.bf16.mxu0 %v1342_v24  ;;  %1209 = vmatprep.mubr.bf16.mxu1 %v1343_v25 }
  0x9b   : > { %1178 = vmatmul.mubr.bf16.gmra.mrb[16].mxu0 %v1344_v26  ;;  %1210 = vmatmul.mubr.bf16.gmra.mrb[16].mxu1 %v1345_v27 }
  0x9c   : > { %1181 = vmatprep.mubr.bf16.mxu0 %v1346_v28  ;;  %1213 = vmatprep.mubr.bf16.mxu1 %v1347_v29 }
  0xa3   : > { %1182 = vmatmul.mubr.bf16.gmra.mrb[20].mxu0 %v1348_v30  ;;  %1214 = vmatmul.mubr.bf16.gmra.mrb[20].mxu1 %v1349_v31 }
  0xa4   : > { %1185 = vmatprep.mubr.bf16.mxu0 %v1350_v32  ;;  %1217 = vmatprep.mubr.bf16.mxu1 %v1351_v33 }
  0xab   : > { %1186 = vmatmul.mubr.bf16.gmra.mrb[24].mxu0 %v1352_v34  ;;  %1218 = vmatmul.mubr.bf16.gmra.mrb[24].mxu1 %v1353_v35 }
  0xac   : > { %1189 = vmatprep.mubr.bf16.mxu0 %v1354_v36  ;;  %1221 = vmatprep.mubr.bf16.mxu1 %v1355_v37 }
  0xb3   : > { %1190 = vmatmul.mubr.bf16.gmra.mrb[28].mxu0 %v1356_v38  ;;  %1222 = vmatmul.mubr.bf16.gmra.mrb[28].mxu1 %v1357_v39 }
 0x14e   : > { %v1163_v41 = vpop.f32.mrb[0].mxu0  ;;  %v1195_v42 = vpop.f32.mrb[0].mxu1 }
 0x14f   : > { %v612_v43 = vadd.f32 %v1163_v41, %v1739_v40  ;;  %v740_v44 = vadd.f32 %v1195_v42, %v1739_v40  ;;  %v603_v45 = vpop.f32.mrb[1].mxu0  ;;  %v731_v46 = vpop.f32.mrb[1].mxu1 }
 0x150   : > { %v604_v47 = vadd.f32 %v1739_v40, %v603_v45  ;;  %v732_v48 = vadd.f32 %v1739_v40, %v731_v46  ;;  %v1164_v49 = vpop.f32.mrb[2].mxu0  ;;  %v1196_v50 = vpop.f32.mrb[2].mxu1 }
 0x151   : > { %860 = vst [vmem:[%s1745_s10 + $0x10] sm:$0xff] %v612_v43  ;;  %892 = vst [vmem:[%s1745_s10 + $0x110] sm:$0xff] %v740_v44  ;;  %v615_v51 = vadd.f32 %v1164_v49, %v1739_v40  ;;  %v743_v52 = vadd.f32 %v1196_v50, %v1739_v40  ;;  %v606_v53 = vpop.f32.mrb[3].mxu0  ;;  %v734_v54 = vpop.f32.mrb[3].mxu1 }
 0x152   : > { %858 = vst [vmem:[%s1745_s10] sm:$0xff] %v604_v47  ;;  %890 = vst [vmem:[%s1745_s10 + $0x100] sm:$0xff] %v732_v48  ;;  %v607_v55 = vadd.f32 %v1739_v40, %v606_v53  ;;  %v735_v56 = vadd.f32 %v1739_v40, %v734_v54 }
 0x153   : > { %861 = vst [vmem:[%s1745_s10 + $0x18] sm:$0xff] %v615_v51  ;;  %893 = vst [vmem:[%s1745_s10 + $0x118] sm:$0xff] %v743_v52 }
 0x154   : > { %859 = vst [vmem:[%s1745_s10 + $0x8] sm:$0xff] %v607_v55  ;;  %891 = vst [vmem:[%s1745_s10 + $0x108] sm:$0xff] %v735_v56 }
 0x156   : > { %v1167_v57 = vpop.f32.mrb[4].mxu0  ;;  %v1199_v58 = vpop.f32.mrb[4].mxu1 }
 0x157   : > { %v628_v59 = vadd.f32 %v1167_v57, %v1739_v40  ;;  %v756_v60 = vadd.f32 %v1199_v58, %v1739_v40  ;;  %v619_v61 = vpop.f32.mrb[5].mxu0  ;;  %v747_v62 = vpop.f32.mrb[5].mxu1 }
 0x158   : > { %v620_v63 = vadd.f32 %v1739_v40, %v619_v61  ;;  %v748_v0 = vadd.f32 %v1739_v40, %v747_v62  ;;  %v1168_v1 = vpop.f32.mrb[6].mxu0  ;;  %v1200_v2 = vpop.f32.mrb[6].mxu1 }
 0x159   : > { %864 = vst [vmem:[%s1745_s10 + $0x30] sm:$0xff] %v628_v59  ;;  %896 = vst [vmem:[%s1745_s10 + $0x130] sm:$0xff] %v756_v60  ;;  %v631_v3 = vadd.f32 %v1168_v1, %v1739_v40  ;;  %v759_v4 = vadd.f32 %v1200_v2, %v1739_v40  ;;  %v622_v5 = vpop.f32.mrb[7].mxu0  ;;  %v750_v6 = vpop.f32.mrb[7].mxu1 }
 0x15a   : > { %862 = vst [vmem:[%s1745_s10 + $0x20] sm:$0xff] %v620_v63  ;;  %894 = vst [vmem:[%s1745_s10 + $0x120] sm:$0xff] %v748_v0  ;;  %v623_v7 = vadd.f32 %v1739_v40, %v622_v5  ;;  %v751_v8 = vadd.f32 %v1739_v40, %v750_v6 }
 0x15b   : > { %865 = vst [vmem:[%s1745_s10 + $0x38] sm:$0xff] %v631_v3  ;;  %897 = vst [vmem:[%s1745_s10 + $0x138] sm:$0xff] %v759_v4 }
 0x15c   : > { %863 = vst [vmem:[%s1745_s10 + $0x28] sm:$0xff] %v623_v7  ;;  %895 = vst [vmem:[%s1745_s10 + $0x128] sm:$0xff] %v751_v8 }
 0x15e   : > { %v1171_v9 = vpop.f32.mrb[8].mxu0  ;;  %v1203_v10 = vpop.f32.mrb[8].mxu1 }
 0x15f   : > { %v644_v11 = vadd.f32 %v1171_v9, %v1739_v40  ;;  %v772_v12 = vadd.f32 %v1203_v10, %v1739_v40  ;;  %v635_v13 = vpop.f32.mrb[9].mxu0  ;;  %v763_v14 = vpop.f32.mrb[9].mxu1 }
 0x160   : > { %v636_v15 = vadd.f32 %v1739_v40, %v635_v13  ;;  %v764_v16 = vadd.f32 %v1739_v40, %v763_v14  ;;  %v1172_v17 = vpop.f32.mrb[10].mxu0  ;;  %v1204_v18 = vpop.f32.mrb[10].mxu1 }
 0x161   : > { %868 = vst [vmem:[%s1745_s10 + $0x50] sm:$0xff] %v644_v11  ;;  %900 = vst [vmem:[%s1745_s10 + $0x150] sm:$0xff] %v772_v12  ;;  %v647_v19 = vadd.f32 %v1172_v17, %v1739_v40  ;;  %v775_v20 = vadd.f32 %v1204_v18, %v1739_v40  ;;  %v638_v21 = vpop.f32.mrb[11].mxu0  ;;  %v766_v22 = vpop.f32.mrb[11].mxu1 }
 0x162   : > { %866 = vst [vmem:[%s1745_s10 + $0x40] sm:$0xff] %v636_v15  ;;  %898 = vst [vmem:[%s1745_s10 + $0x140] sm:$0xff] %v764_v16  ;;  %v639_v23 = vadd.f32 %v1739_v40, %v638_v21  ;;  %v767_v24 = vadd.f32 %v1739_v40, %v766_v22 }
 0x163   : > { %869 = vst [vmem:[%s1745_s10 + $0x58] sm:$0xff] %v647_v19  ;;  %901 = vst [vmem:[%s1745_s10 + $0x158] sm:$0xff] %v775_v20 }
 0x164   : > { %867 = vst [vmem:[%s1745_s10 + $0x48] sm:$0xff] %v639_v23  ;;  %899 = vst [vmem:[%s1745_s10 + $0x148] sm:$0xff] %v767_v24 }
 0x166   : > { %v1175_v25 = vpop.f32.mrb[12].mxu0  ;;  %v1207_v26 = vpop.f32.mrb[12].mxu1 }
 0x167   : > { %v660_v27 = vadd.f32 %v1175_v25, %v1739_v40  ;;  %v788_v28 = vadd.f32 %v1207_v26, %v1739_v40  ;;  %v651_v29 = vpop.f32.mrb[13].mxu0  ;;  %v779_v30 = vpop.f32.mrb[13].mxu1 }
 0x168   : > { %v652_v31 = vadd.f32 %v1739_v40, %v651_v29  ;;  %v780_v32 = vadd.f32 %v1739_v40, %v779_v30  ;;  %v1176_v33 = vpop.f32.mrb[14].mxu0  ;;  %v1208_v34 = vpop.f32.mrb[14].mxu1 }
 0x169   : > { %872 = vst [vmem:[%s1745_s10 + $0x70] sm:$0xff] %v660_v27  ;;  %904 = vst [vmem:[%s1745_s10 + $0x170] sm:$0xff] %v788_v28  ;;  %v663_v35 = vadd.f32 %v1176_v33, %v1739_v40  ;;  %v791_v36 = vadd.f32 %v1208_v34, %v1739_v40  ;;  %v654_v37 = vpop.f32.mrb[15].mxu0  ;;  %v782_v38 = vpop.f32.mrb[15].mxu1 }
 0x16a   : > { %870 = vst [vmem:[%s1745_s10 + $0x60] sm:$0xff] %v652_v31  ;;  %902 = vst [vmem:[%s1745_s10 + $0x160] sm:$0xff] %v780_v32  ;;  %v655_v39 = vadd.f32 %v1739_v40, %v654_v37  ;;  %v783_v41 = vadd.f32 %v1739_v40, %v782_v38 }
 0x16b   : > { %873 = vst [vmem:[%s1745_s10 + $0x78] sm:$0xff] %v663_v35  ;;  %905 = vst [vmem:[%s1745_s10 + $0x178] sm:$0xff] %v791_v36 }
 0x16c   : > { %871 = vst [vmem:[%s1745_s10 + $0x68] sm:$0xff] %v655_v39  ;;  %903 = vst [vmem:[%s1745_s10 + $0x168] sm:$0xff] %v783_v41 }
 0x16e   : > { %v1179_v42 = vpop.f32.mrb[16].mxu0  ;;  %v1211_v43 = vpop.f32.mrb[16].mxu1 }
 0x16f   : > { %v676_v44 = vadd.f32 %v1179_v42, %v1739_v40  ;;  %v804_v45 = vadd.f32 %v1211_v43, %v1739_v40  ;;  %v667_v46 = vpop.f32.mrb[17].mxu0  ;;  %v795_v47 = vpop.f32.mrb[17].mxu1 }
 0x170   : > { %v668_v48 = vadd.f32 %v1739_v40, %v667_v46  ;;  %v796_v49 = vadd.f32 %v1739_v40, %v795_v47  ;;  %v1180_v50 = vpop.f32.mrb[18].mxu0  ;;  %v1212_v51 = vpop.f32.mrb[18].mxu1 }
 0x171   : > { %876 = vst [vmem:[%s1745_s10 + $0x90] sm:$0xff] %v676_v44  ;;  %908 = vst [vmem:[%s1745_s10 + $0x190] sm:$0xff] %v804_v45  ;;  %v679_v52 = vadd.f32 %v1180_v50, %v1739_v40  ;;  %v807_v53 = vadd.f32 %v1212_v51, %v1739_v40  ;;  %v670_v54 = vpop.f32.mrb[19].mxu0  ;;  %v798_v55 = vpop.f32.mrb[19].mxu1 }
 0x172   : > { %874 = vst [vmem:[%s1745_s10 + $0x80] sm:$0xff] %v668_v48  ;;  %906 = vst [vmem:[%s1745_s10 + $0x180] sm:$0xff] %v796_v49  ;;  %v671_v56 = vadd.f32 %v1739_v40, %v670_v54  ;;  %v799_v57 = vadd.f32 %v1739_v40, %v798_v55 }
 0x173   : > { %877 = vst [vmem:[%s1745_s10 + $0x98] sm:$0xff] %v679_v52  ;;  %909 = vst [vmem:[%s1745_s10 + $0x198] sm:$0xff] %v807_v53 }
 0x174   : > { %875 = vst [vmem:[%s1745_s10 + $0x88] sm:$0xff] %v671_v56  ;;  %907 = vst [vmem:[%s1745_s10 + $0x188] sm:$0xff] %v799_v57 }
 0x176   : > { %v1183_v58 = vpop.f32.mrb[20].mxu0  ;;  %v1215_v59 = vpop.f32.mrb[20].mxu1 }
 0x177   : > { %v692_v60 = vadd.f32 %v1183_v58, %v1739_v40  ;;  %v820_v61 = vadd.f32 %v1215_v59, %v1739_v40  ;;  %v683_v62 = vpop.f32.mrb[21].mxu0  ;;  %v811_v63 = vpop.f32.mrb[21].mxu1 }
 0x178   : > { %v684_v0 = vadd.f32 %v1739_v40, %v683_v62  ;;  %v812_v1 = vadd.f32 %v1739_v40, %v811_v63  ;;  %v1184_v2 = vpop.f32.mrb[22].mxu0  ;;  %v1216_v3 = vpop.f32.mrb[22].mxu1 }
 0x179   : > { %880 = vst [vmem:[%s1745_s10 + $0xb0] sm:$0xff] %v692_v60  ;;  %912 = vst [vmem:[%s1745_s10 + $0x1b0] sm:$0xff] %v820_v61  ;;  %v695_v4 = vadd.f32 %v1184_v2, %v1739_v40  ;;  %v823_v5 = vadd.f32 %v1216_v3, %v1739_v40  ;;  %v686_v6 = vpop.f32.mrb[23].mxu0  ;;  %v814_v7 = vpop.f32.mrb[23].mxu1 }
 0x17a   : > { %878 = vst [vmem:[%s1745_s10 + $0xa0] sm:$0xff] %v684_v0  ;;  %910 = vst [vmem:[%s1745_s10 + $0x1a0] sm:$0xff] %v812_v1  ;;  %v687_v8 = vadd.f32 %v1739_v40, %v686_v6  ;;  %v815_v9 = vadd.f32 %v1739_v40, %v814_v7 }
 0x17b   : > { %881 = vst [vmem:[%s1745_s10 + $0xb8] sm:$0xff] %v695_v4  ;;  %913 = vst [vmem:[%s1745_s10 + $0x1b8] sm:$0xff] %v823_v5 }
 0x17c   : > { %879 = vst [vmem:[%s1745_s10 + $0xa8] sm:$0xff] %v687_v8  ;;  %911 = vst [vmem:[%s1745_s10 + $0x1a8] sm:$0xff] %v815_v9 }
 0x17e   : > { %v1187_v10 = vpop.f32.mrb[24].mxu0  ;;  %v1219_v11 = vpop.f32.mrb[24].mxu1 }
 0x17f   : > { %v708_v12 = vadd.f32 %v1187_v10, %v1739_v40  ;;  %v836_v13 = vadd.f32 %v1219_v11, %v1739_v40  ;;  %v699_v14 = vpop.f32.mrb[25].mxu0  ;;  %v827_v15 = vpop.f32.mrb[25].mxu1 }
 0x180   : > { %v700_v16 = vadd.f32 %v1739_v40, %v699_v14  ;;  %v828_v17 = vadd.f32 %v1739_v40, %v827_v15  ;;  %v1188_v18 = vpop.f32.mrb[26].mxu0  ;;  %v1220_v19 = vpop.f32.mrb[26].mxu1 }
 0x181   : > { %884 = vst [vmem:[%s1745_s10 + $0xd0] sm:$0xff] %v708_v12  ;;  %916 = vst [vmem:[%s1745_s10 + $0x1d0] sm:$0xff] %v836_v13  ;;  %v711_v20 = vadd.f32 %v1188_v18, %v1739_v40  ;;  %v839_v21 = vadd.f32 %v1220_v19, %v1739_v40  ;;  %v702_v22 = vpop.f32.mrb[27].mxu0  ;;  %v830_v23 = vpop.f32.mrb[27].mxu1 }
 0x182   : > { %882 = vst [vmem:[%s1745_s10 + $0xc0] sm:$0xff] %v700_v16  ;;  %914 = vst [vmem:[%s1745_s10 + $0x1c0] sm:$0xff] %v828_v17  ;;  %v703_v24 = vadd.f32 %v1739_v40, %v702_v22  ;;  %v831_v25 = vadd.f32 %v1739_v40, %v830_v23 }
 0x183   : > { %885 = vst [vmem:[%s1745_s10 + $0xd8] sm:$0xff] %v711_v20  ;;  %917 = vst [vmem:[%s1745_s10 + $0x1d8] sm:$0xff] %v839_v21 }
 0x184   : > { %883 = vst [vmem:[%s1745_s10 + $0xc8] sm:$0xff] %v703_v24  ;;  %915 = vst [vmem:[%s1745_s10 + $0x1c8] sm:$0xff] %v831_v25 }
 0x186   : > { %v1191_v26 = vpop.f32.mrb[28].mxu0  ;;  %v1223_v27 = vpop.f32.mrb[28].mxu1 }
 0x187   : > { %v724_v28 = vadd.f32 %v1191_v26, %v1739_v40  ;;  %v852_v29 = vadd.f32 %v1223_v27, %v1739_v40  ;;  %v715_v30 = vpop.f32.mrb[29].mxu0  ;;  %v843_v31 = vpop.f32.mrb[29].mxu1 }
 0x188   : > { %v716_v32 = vadd.f32 %v1739_v40, %v715_v30  ;;  %v844_v33 = vadd.f32 %v1739_v40, %v843_v31  ;;  %v1192_v34 = vpop.f32.mrb[30].mxu0  ;;  %v1224_v35 = vpop.f32.mrb[30].mxu1 }
 0x189   : > { %888 = vst [vmem:[%s1745_s10 + $0xf0] sm:$0xff] %v724_v28  ;;  %920 = vst [vmem:[%s1745_s10 + $0x1f0] sm:$0xff] %v852_v29  ;;  %v727_v36 = vadd.f32 %v1192_v34, %v1739_v40  ;;  %v855_v37 = vadd.f32 %v1224_v35, %v1739_v40  ;;  %v718_v38 = vpop.f32.mrb[31].mxu0  ;;  %v846_v39 = vpop.f32.mrb[31].mxu1 }
 0x18a   : > { %886 = vst [vmem:[%s1745_s10 + $0xe0] sm:$0xff] %v716_v32  ;;  %918 = vst [vmem:[%s1745_s10 + $0x1e0] sm:$0xff] %v844_v33  ;;  %v719_v41 = vadd.f32 %v1739_v40, %v718_v38  ;;  %v847_v42 = vadd.f32 %v1739_v40, %v846_v39 }
 0x18b   : > { %889 = vst [vmem:[%s1745_s10 + $0xf8] sm:$0xff] %v727_v36  ;;  %921 = vst [vmem:[%s1745_s10 + $0x1f8] sm:$0xff] %v855_v37 }
 0x18c   : > { %887 = vst [vmem:[%s1745_s10 + $0xe8] sm:$0xff] %v719_v41  ;;  %919 = vst [vmem:[%s1745_s10 + $0x1e8] sm:$0xff] %v847_v42 }
 0x18d   : > { %1429 = shalt.err (!%p1426_p5)
}
 0x18e   : > { %s1430_s29 = scalar_lea.hbm %s1868_s19, 8192  ;;  %s1434_s20 = scalar_lea.hbm %s1930_s3, 16384 }
 0x18f   : > { %p1431_p9 = scmp.ne.s32.totalorder %s1868_s19, %s1430_s29  ;;  %p1435_p3 = scmp.lt.u32.totalorder %s1868_s19, %s1930_s3 }
 0x190   : > { %p1436_p7 = scmp.lt.u32.totalorder %s1434_s20, %s1430_s29  ;;  %p1438_p4 = scmp.lt.u32.totalorder %s1430_s29, %s1868_s19 }
 0x191   : > { %p1432_p1 = pnand %p1431_p9, %p1630_p10 }
 0x192   : > { %p1437_p13 = por %p1436_p7, %p1435_p3 }
 0x193   : > { %p1433_p2 = pneg %p1432_p1 }
 0x194   : > { %p1439_p6 = por %p1438_p4, %p1437_p13 }
 0x196   : > { %p1440_p8 = pnand %p1439_p6, %p1433_p2 }
 0x198   : > { %1443 = shalt.err (!%p1440_p8)
}
 0x199   : > { %s1509_s10 = smov 128   ;;  %s1510_s11 = smov 8  }
 0x19a   : > { %1247 = dma.vmem_to_hbm [thread:$0]  (%p1630_p10), %s1870_s9, 8192, %s1868_s19, %s923_s25, %s1509_s10, %s1509_s10, %s1510_s11  }
 0x19b PF: > { %s952_s15 = sand.u32 1, %s1482_s12   ;;  %p1948_p12 = scmp.ne.s32.totalorder %s1938_s23, 0 }
 0x19c   : > { %p1949_p11 = scmp.ge.s32.totalorder %s1502_s17, 2  ;;  %s953_s18 = scalar_lea.sflag [#allocation4], %s952_s15 }
 0x19e   : > { %p1258_p0 = pnand %p1949_p11, %p1948_p12 }
 0x1a0   : > { %1477 = dma.done.wait (!%p1258_p0), %s953_s18, 8192  }
 0x1a1   : > { %1479 = vsyncadd (!%p1258_p0), %s953_s18, 4294959104  ;;  %s20_s17 = sadd.s32 1, %s1502_s17   ;;  %s1950_s12 = smov %s1486_s13 }
 0x1a2   : > { %p17_p5 = scmp.ge.s32.totalorder %s20_s17, 4   ;;  %s1951_s13 = smov %s1490_s14 }
 0x1a3   : > { %s1952_s14 = smov %s1639_s5  ;;  %s1953_s15 = smov %s1498_s16 }
 0x1a4   : > { %s1954_s16 = smov %s1956_s28  ;;  %19 = sbr.rel (!%p17_p5) target bundleno = 7 (0x7), region = 85 }
 0x1ab   :  { %958 = vsyncpa [#allocation3], 1 }
 0x1ac   :  { %960 = vsyncpa [#allocation3 + $0x1], 1 }
 0x1ad   :  { %961 = vsyncpa [#allocation6], 1 }
 0x1ae   :  { %962 = vsyncpa [#allocation4], 1 }
 0x1af   :  { %964 = vsyncpa [#allocation4 + $0x1], 1 }

</bundles_post_ra>
